<compile_context>
chip_gen: v7x
topology: tpu7x:2x2x1
jax: 0.10.0
libtpu: 0.0.40
codegen_flags: <defaults>
</compile_context>

<pallas_src>
import jax
import jax.numpy as jnp
from jax.experimental import pallas as pl
from jax.experimental.pallas import tpu as pltpu

EPS = 1e-5  # PyTorch BatchNorm default eps


# ----------------------------------------------------------------------------
# Kernel 1: project_noise  (Linear + BatchNorm1d(train) + ReLU), column-tiled.
# Columns of lin_* are pre-permuted so the output is already NHWC-flat ordered.
# ----------------------------------------------------------------------------
def _noise_proj_kernel(z_ref, w_ref, b_ref, g_ref, beta_ref, out_ref):
    z = z_ref[...].astype(jnp.float32)                               # (N, D)
    y = jnp.dot(z, w_ref[...], preferred_element_type=jnp.float32)   # (N, TF)
    y = y + b_ref[...]
    inv_n = 1.0 / y.shape[0]
    s = jnp.sum(y, axis=0, keepdims=True)                            # single pass
    ss = jnp.sum(y * y, axis=0, keepdims=True)
    mean = s * inv_n
    var = ss * inv_n - mean * mean                                   # biased var
    scale = g_ref[...] * jax.lax.rsqrt(var + EPS)
    shift = beta_ref[...] - mean * scale
    out_ref[...] = jnp.maximum(y * scale + shift, 0.0)


# ----------------------------------------------------------------------------
# Kernel 2: the conv stack (first conv, residual blocks, 1x1 conv + tanh)
# ----------------------------------------------------------------------------
def _make_generator_kernel(num_blocks, N, H, W, c_img, nc, filters, cpad):
    NHW = N * H * W
    inv_nhw = 1.0 / NHW

    def kernel(*refs):
        x_ref, n_ref, c1w_ref, c1b_ref = refs[0], refs[1], refs[2], refs[3]
        idx = 4
        blocks = []
        for _ in range(num_blocks):
            blocks.append(refs[idx:idx + 6])
            idx += 6
        fw_ref, fb_ref = refs[idx], refs[idx + 1]
        out_ref = refs[idx + 2]
        pad_ref, patch_ref = refs[idx + 3], refs[idx + 4]

        # Zero the padded scratch once; its 1-pixel halo stays zero for every conv.
        pad_ref[...] = jnp.zeros_like(pad_ref)

        # Channel-concat (image ++ noise) directly into the padded scratch interior.
        pad_ref[:, 1:H + 1, 1:W + 1, 0:c_img] = x_ref[...].astype(jnp.float32)
        pad_ref[:, 1:H + 1, 1:W + 1, c_img:c_img + nc] = n_ref[...].astype(jnp.float32)

        def conv3x3(w_ref):
            # im2col: pack the 9 shifted windows along the contraction axis in a
            # persistent VMEM patch buffer, then one MXU matmul with K = 9*cpad.
            for dy in range(3):
                for dx in range(3):
                    k = 3 * dy + dx
                    win = pad_ref[:, dy:dy + H, dx:dx + W, :]        # (N,H,W,cpad)
                    patch_ref[:, k * cpad:(k + 1) * cpad] = win.reshape(NHW, cpad)
            return jnp.dot(patch_ref[...], w_ref[...],
                           preferred_element_type=jnp.float32)       # (NHW, filters)

        def write_interior(v):
            pad_ref[:, 1:H + 1, 1:W + 1, 0:filters] = v.reshape(N, H, W, filters)

        def bn_scale_shift(x, g_ref, b_ref):
            # single-pass batch stats over (N,H,W), biased variance; fold
            # gamma*rsqrt(var+eps) into one fused scale/shift.
            s = jnp.sum(x, axis=0, keepdims=True)
            ss = jnp.sum(x * x, axis=0, keepdims=True)
            mean = s * inv_nhw
            var = ss * inv_nhw - mean * mean
            scale = g_ref[...] * jax.lax.rsqrt(var + EPS)
            shift = b_ref[...] - mean * scale
            return x * scale + shift

        # First conv (bias) + ReLU
        h = jnp.maximum(conv3x3(c1w_ref) + c1b_ref[...], 0.0)        # (NHW, filters)

        # Residual blocks (identity shortcut: stride 1, in_channels == filters)
        for (w1_ref, g1_ref, b1_ref, w2_ref, g2_ref, b2_ref) in blocks:
            write_interior(h)
            r = jnp.maximum(bn_scale_shift(conv3x3(w1_ref), g1_ref, b1_ref), 0.0)
            write_interior(r)
            h = bn_scale_shift(conv3x3(w2_ref), g2_ref, b2_ref) + h

        # 1x1 conv (bias) + tanh
        out_ref[...] = jnp.tanh(
            jnp.dot(h, fw_ref[...], preferred_element_type=jnp.float32) + fb_ref[...])

    return kernel


# ----------------------------------------------------------------------------
# Wrapper
# ----------------------------------------------------------------------------
def pixelda_g_forward(inputs_nchw, noise_vector, params):
    N, C, H, W = inputs_nchw.shape
    nc = params["noise_channels"]
    filters = params["c1_w"].shape[-1]
    out_ch = params["f_w"].shape[-1]
    num_blocks = len(params["blocks"])
    noise_dim = noise_vector.shape[1]
    F = nc * H * W
    c0 = C + nc
    cpad = ((max(c0, filters) + 7) // 8) * 8     # channel width of the padded scratch

    # --- offline-style parameter packing (tiny, one-time ops) ----------------
    # project_noise params: permute feature columns from NCHW-flat order
    # (PyTorch .view(N, nc, H, W)) to NHWC-flat order.
    def to_nhwc_cols(p):
        return p.reshape(p.shape[0], nc, H, W).transpose(0, 2, 3, 1).reshape(p.shape[0], F)

    lin_w = to_nhwc_cols(params["lin_w"])
    lin_b = to_nhwc_cols(params["lin_b"])
    lin_g = to_nhwc_cols(params["lin_g"])
    lin_beta = to_nhwc_cols(params["lin_beta"])

    # conv weights: HWIO -> zero-pad Cin to cpad -> (9*cpad, Cout) im2col layout
    def pack_conv(w_hwio):
        kh, kw, cin, cout = w_hwio.shape
        w = jnp.pad(w_hwio, ((0, 0), (0, 0), (0, cpad - cin), (0, 0)))
        return w.reshape(kh * kw * cpad, cout)

    c1_w = pack_conv(params["c1_w"])
    packed_blocks = []
    for blk in params["blocks"]:
        packed_blocks += [pack_conv(blk["w1"]), blk["g1"], blk["b1"],
                          pack_conv(blk["w2"]), blk["g2"], blk["b2"]]

    # --- kernel 1: noise projection (column-tiled, 'parallel' grid) ----------
    tf = 512 if (F % 512 == 0) else F
    noise_flat = pl.pallas_call(
        _noise_proj_kernel,
        out_shape=jax.ShapeDtypeStruct((N, F), jnp.float32),
        grid=(F // tf,),
        in_specs=[
            pl.BlockSpec((N, noise_dim), lambda j: (0, 0)),
            pl.BlockSpec((noise_dim, tf), lambda j: (0, j)),
            pl.BlockSpec((1, tf), lambda j: (0, j)),
            pl.BlockSpec((1, tf), lambda j: (0, j)),
            pl.BlockSpec((1, tf), lambda j: (0, j)),
        ],
        out_specs=pl.BlockSpec((N, tf), lambda j: (0, j)),
        compiler_params=pltpu.CompilerParams(dimension_semantics=("parallel",)),
    )(noise_vector, lin_w, lin_b, lin_g, lin_beta)

    noise_nhwc = noise_flat.reshape(N, H, W, nc)      # columns already NHWC-ordered
    x_nhwc = inputs_nchw.transpose(0, 2, 3, 1)

    gen_args = [x_nhwc, noise_nhwc, c1_w, params["c1_b"]] + packed_blocks \
               + [params["f_w"], params["f_b"]]

    vmem = pl.BlockSpec(memory_space=pltpu.MemorySpace.VMEM)
    out_flat = pl.pallas_call(
        _make_generator_kernel(num_blocks, N, H, W, C, nc, filters, cpad),
        out_shape=jax.ShapeDtypeStruct((N * H * W, out_ch), jnp.float32),
        in_specs=[vmem] * len(gen_args),
        out_specs=vmem,
        scratch_shapes=[
            pltpu.VMEM((N, H + 2, W + 2, cpad), jnp.float32),   # zero-halo activations
            pltpu.VMEM((N * H * W, 9 * cpad), jnp.float32),     # im2col patch buffer
        ],
    )(*gen_args)

    return out_flat.reshape(N, H, W, out_ch).transpose(0, 3, 1, 2)   # back to NCHW


# ----------------------------------------------------------------------------
# Deterministic synthetic parameters (canonical / PyTorch-like ordering)
# ----------------------------------------------------------------------------
def init_params(key, *, noise_dim, noise_channels, image_channels, H, W,
                filters, out_channels, num_blocks):
    n_keys = 8 + 6 * num_blocks
    keys = list(jax.random.split(key, n_keys))

    def nrm(k, shape, scale=0.05):
        return scale * jax.random.normal(k, shape, jnp.float32)

    F = noise_channels * H * W
    c0 = image_channels + noise_channels
    params = {
        "noise_channels": noise_channels,
        # project_noise: Linear(noise_dim -> F) + BN1d  (NCHW-flat column order)
        "lin_w": nrm(keys[0], (noise_dim, F)),
        "lin_b": nrm(keys[1], (1, F)),
        "lin_g": 1.0 + nrm(keys[2], (1, F), 0.1),
        "lin_beta": nrm(keys[3], (1, F), 0.1),
        # first conv (HWIO) + bias
        "c1_w": nrm(keys[4], (3, 3, c0, filters)),
        "c1_b": nrm(keys[5], (1, filters)),
        # final 1x1 conv
        "f_w": nrm(keys[6], (filters, out_channels)),
        "f_b": nrm(keys[7], (1, out_channels)),
        "blocks": [],
    }
    ki = 8
    for _ in range(num_blocks):
        params["blocks"].append({
            "w1": nrm(keys[ki + 0], (3, 3, filters, filters)),
            "g1": 1.0 + nrm(keys[ki + 1], (1, filters), 0.1),
            "b1": nrm(keys[ki + 2], (1, filters), 0.1),
            "w2": nrm(keys[ki + 3], (3, 3, filters, filters)),
            "g2": 1.0 + nrm(keys[ki + 4], (1, filters), 0.1),
            "b2": nrm(keys[ki + 5], (1, filters), 0.1),
        })
        ki += 6
    return params


# ----------------------------------------------------------------------------
# Pure-JAX reference (same math, XLA convs) for validation
# ----------------------------------------------------------------------------
def reference_forward(inputs_nchw, noise_vector, params):
    N, C, H, W = inputs_nchw.shape
    nc = params["noise_channels"]

    y = noise_vector @ params["lin_w"] + params["lin_b"]
    mean = y.mean(0, keepdims=True)
    var = ((y - mean) ** 2).mean(0, keepdims=True)
    y = (y - mean) / jnp.sqrt(var + EPS) * params["lin_g"] + params["lin_beta"]
    y = jnp.maximum(y, 0.0)
    noise_img = y.reshape(N, nc, H, W)
    x = jnp.concatenate([inputs_nchw, noise_img], axis=1).transpose(0, 2, 3, 1)  # NHWC

    def conv3(x, w):
        return jax.lax.conv_general_dilated(
            x, w, (1, 1), "SAME", dimension_numbers=("NHWC", "HWIO", "NHWC"))

    def bn(x, g, b):
        m = x.mean((0, 1, 2), keepdims=True)
        v = ((x - m) ** 2).mean((0, 1, 2), keepdims=True)
        return (x - m) / jnp.sqrt(v + EPS) * g.reshape(1, 1, 1, -1) + b.reshape(1, 1, 1, -1)

    h = jnp.maximum(conv3(x, params["c1_w"]) + params["c1_b"].reshape(1, 1, 1, -1), 0.0)
    for blk in params["blocks"]:
        r = jnp.maximum(bn(conv3(h, blk["w1"]), blk["g1"], blk["b1"]), 0.0)
        r = bn(conv3(r, blk["w2"]), blk["g2"], blk["b2"])
        h = r + h
    y = jnp.tanh(h @ params["f_w"] + params["f_b"].reshape(1, 1, 1, -1))
    return y.transpose(0, 3, 1, 2)


if __name__ == "__main__":
    # opt-equivalent hyperparameters (small): image_size = [16, 16, 3]
    N, H, W, C = 2, 16, 16, 3
    noise_dim, noise_channels = 16, 4              # opt.G_noise_dim, opt.G_noise_channels
    filters, out_channels, num_blocks = 32, 3, 2   # opt.ngf, out_channels, opt.G_residual_blocks

    key = jax.random.PRNGKey(0)
    k_in, k_noise, k_params = jax.random.split(key, 3)
    inputs = jax.random.normal(k_in, (N, C, H, W), jnp.float32)          # NCHW like PyTorch
    noise_vec = jax.random.normal(k_noise, (N, noise_dim), jnp.float32)

    params = init_params(k_params, noise_dim=noise_dim, noise_channels=noise_channels,
                         image_channels=C, H=H, W=W, filters=filters,
                         out_channels=out_channels, num_blocks=num_blocks)

    out = jax.block_until_ready(pixelda_g_forward(inputs, noise_vec, params))
    assert out.shape == (N, out_channels, H, W), out.shape

    ref = reference_forward(inputs, noise_vec, params)
    max_err = float(jnp.max(jnp.abs(out - ref)))
    if max_err > 5e-3:
        raise AssertionError(f"Pallas kernel mismatch vs reference, max_err={max_err}")

    print("KERNEL_OK")
</pallas_src>

<mosaic_0001>
module attributes {stable_mosaic.version = 11 : i64} {
  func.func @_noise_proj_kernel(%arg0: i32, %arg1: memref<2x16xf32, #tpu.memory_space<vmem>>, %arg2: memref<16x512xf32, #tpu.memory_space<vmem>>, %arg3: memref<1x512xf32, #tpu.memory_space<vmem>>, %arg4: memref<1x512xf32, #tpu.memory_space<vmem>>, %arg5: memref<1x512xf32, #tpu.memory_space<vmem>>, %arg6: memref<2x512xf32, #tpu.memory_space<vmem>>) attributes {dimension_semantics = [#tpu.dimension_semantics<parallel>], iteration_bounds = array<i64: 2>, scalar_prefetch = 0 : i64, scratch_operands = 0 : i64, tpu.core_type = #tpu.core_type<tc>, window_params = [{pipeline_mode = #tpu.pipeline_mode<synchronous>, transform_indices = @transform_0, window_bounds = array<i64: 2, 16>}, {transform_indices = @transform_1, window_bounds = array<i64: 16, 512>}, {transform_indices = @transform_2, window_bounds = array<i64: 1, 512>}, {transform_indices = @transform_3, window_bounds = array<i64: 1, 512>}, {transform_indices = @transform_4, window_bounds = array<i64: 1, 512>}, {transform_indices = @transform_5, window_bounds = array<i64: 2, 512>}]} {
    %c0 = arith.constant 0 : index
    %c0_0 = arith.constant 0 : index
    %0 = vector.load %arg1[%c0, %c0_0] : memref<2x16xf32, #tpu.memory_space<vmem>>, vector<2x16xf32>
    %c0_1 = arith.constant 0 : index
    %c0_2 = arith.constant 0 : index
    %1 = vector.load %arg2[%c0_1, %c0_2] : memref<16x512xf32, #tpu.memory_space<vmem>>, vector<16x512xf32>
    %cst = arith.constant dense<0.000000e+00> : vector<2x512xf32>
    %2 = tpu.matmul %0, %1, %cst {dimension_numbers = #tpu.dot_dimension_numbers<[1], [0], [0], [1], [0, 0, 1, 1], [], []>} : vector<2x16xf32>, vector<16x512xf32>, vector<2x512xf32> -> vector<2x512xf32>
    %c0_3 = arith.constant 0 : index
    %c0_4 = arith.constant 0 : index
    %3 = vector.load %arg3[%c0_3, %c0_4] : memref<1x512xf32, #tpu.memory_space<vmem>>, vector<1x512xf32>
    %4 = vector.broadcast %3 : vector<1x512xf32> to vector<2x512xf32>
    %5 = arith.addf %2, %4 : vector<2x512xf32>
    %cst_5 = arith.constant dense<0.000000e+00> : vector<512xf32>
    %6 = vector.multi_reduction <add>, %5, %cst_5 [0] : vector<2x512xf32> to vector<512xf32>
    %7 = vector.shape_cast %6 : vector<512xf32> to vector<1x512xf32>
    %8 = arith.mulf %5, %5 : vector<2x512xf32>
    %cst_6 = arith.constant dense<0.000000e+00> : vector<512xf32>
    %9 = vector.multi_reduction <add>, %8, %cst_6 [0] : vector<2x512xf32> to vector<512xf32>
    %10 = vector.shape_cast %9 : vector<512xf32> to vector<1x512xf32>
    %cst_7 = arith.constant 5.000000e-01 : f32
    %11 = vector.broadcast %cst_7 : f32 to vector<1x512xf32>
    %12 = arith.mulf %7, %11 : vector<1x512xf32>
    %cst_8 = arith.constant 5.000000e-01 : f32
    %13 = vector.broadcast %cst_8 : f32 to vector<1x512xf32>
    %14 = arith.mulf %10, %13 : vector<1x512xf32>
    %15 = arith.mulf %12, %12 : vector<1x512xf32>
    %16 = arith.subf %14, %15 : vector<1x512xf32>
    %c0_9 = arith.constant 0 : index
    %c0_10 = arith.constant 0 : index
    %17 = vector.load %arg4[%c0_9, %c0_10] : memref<1x512xf32, #tpu.memory_space<vmem>>, vector<1x512xf32>
    %cst_11 = arith.constant 9.99999974E-6 : f32
    %18 = vector.broadcast %cst_11 : f32 to vector<1x512xf32>
    %19 = arith.addf %16, %18 : vector<1x512xf32>
    %20 = math.rsqrt %19 : vector<1x512xf32>
    %21 = arith.mulf %17, %20 : vector<1x512xf32>
    %c0_12 = arith.constant 0 : index
    %c0_13 = arith.constant 0 : index
    %22 = vector.load %arg5[%c0_12, %c0_13] : memref<1x512xf32, #tpu.memory_space<vmem>>, vector<1x512xf32>
    %23 = arith.mulf %12, %21 : vector<1x512xf32>
    %24 = arith.subf %22, %23 : vector<1x512xf32>
    %25 = vector.broadcast %21 : vector<1x512xf32> to vector<2x512xf32>
    %26 = arith.mulf %5, %25 : vector<2x512xf32>
    %27 = vector.broadcast %24 : vector<1x512xf32> to vector<2x512xf32>
    %28 = arith.addf %26, %27 : vector<2x512xf32>
    %cst_14 = arith.constant 0.000000e+00 : f32
    %29 = vector.broadcast %cst_14 : f32 to vector<2x512xf32>
    %30 = arith.maximumf %28, %29 : vector<2x512xf32>
    %c0_15 = arith.constant 0 : index
    %c0_16 = arith.constant 0 : index
    %31 = vector.load %arg6[%c0_15, %c0_16] : memref<2x512xf32, #tpu.memory_space<vmem>>, vector<2x512xf32>
    tpu.vector_store %arg6[%c0_15, %c0_16], %30 {strides = array<i32>} : memref<2x512xf32, #tpu.memory_space<vmem>>, vector<2x512xf32>,
    return
  }
  func.func @transform_0(%arg0: i32) -> (i32, i32) {
    %c0_i32 = arith.constant 0 : i32
    %c0_i32_0 = arith.constant 0 : i32
    %c0_i32_1 = arith.constant 0 : i32
    return %c0_i32, %c0_i32_0 : i32, i32
  }
  func.func @transform_1(%arg0: i32) -> (i32, i32) {
    %c0_i32 = arith.constant 0 : i32
    %c0_i32_0 = arith.constant 0 : i32
    return %c0_i32, %arg0 : i32, i32
  }
  func.func @transform_2(%arg0: i32) -> (i32, i32) {
    %c0_i32 = arith.constant 0 : i32
    %c0_i32_0 = arith.constant 0 : i32
    return %c0_i32, %arg0 : i32, i32
  }
  func.func @transform_3(%arg0: i32) -> (i32, i32) {
    %c0_i32 = arith.constant 0 : i32
    %c0_i32_0 = arith.constant 0 : i32
    return %c0_i32, %arg0 : i32, i32
  }
  func.func @transform_4(%arg0: i32) -> (i32, i32) {
    %c0_i32 = arith.constant 0 : i32
    %c0_i32_0 = arith.constant 0 : i32
    return %c0_i32, %arg0 : i32, i32
  }
  func.func @transform_5(%arg0: i32) -> (i32, i32) {
    %c0_i32 = arith.constant 0 : i32
    %c0_i32_0 = arith.constant 0 : i32
    return %c0_i32, %arg0 : i32, i32
  }
}

</mosaic_0001>

<bundles_post_ra>
// kernel: tpu_custom_call.1
= control target key start
LH: loop header
LB: loop body
LE: loop exit
PB: predicated region body
PF: predicated region fallthrough
CT: control target
= control target key end

     0   :  { %s1602_s0 = inlined_call_operand.hbm [shape: f32[2,16], index: 0, kind: input, shape index: {}]   ;;  %s1603_s1 = inlined_call_operand.hbm [shape: f32[16,1024], index: 1, kind: input, shape index: {}]   ;;  %s1604_s2 = inlined_call_operand.hbm [shape: f32[1,1024], index: 2, kind: input, shape index: {}]   ;;  %s1605_s3 = inlined_call_operand.vmem [shape: f32[1,1024], index: 3, kind: input, shape index: {}]   ;;  %s1606_s4 = inlined_call_operand.hbm [shape: f32[1,1024], index: 4, kind: input, shape index: {}]   ;;  %s1607_s5 = inlined_call_operand.hbm [shape: f32[2,1024], index: 5, kind: output, shape index: {}]  }
   0x1   :  { %1621 = sst [smem:[#allocation18_spill]] %s1603_s1 }
   0x2   :  { %10 = vsyncpa [#allocation3], 0 }
   0x3   :  { %11 = vsyncpa [#allocation6], 0 }
   0x4   :  { %13 = vsyncpa [#allocation6 + $0x1], 0 }
   0x5   :  { %14 = vsyncpa [#allocation9], 0 }
   0x6   :  { %16 = vsyncpa [#allocation9 + $0x1], 0 }
   0x7   :  { %17 = vsyncpa [#allocation4], 0 }
   0x8   :  { %19 = vsyncpa [#allocation4 + $0x1], 0  ;;  %s1261_s18 = smov 0   ;;  %s1263_s19 = smov 0  }
   0x9   :  { %s1265_s20 = smov 0   ;;  %s1267_s21 = smov 0  }
   0xa LB: > { %1622 = sst [smem:[#allocation15_spill]] %s1214_s20  ;;  %s1282_s22 = sadd.s32 1, %s1218_s21   ;;  %s1218_s21 = sphi %s1267_s21, %s1645_s21   ;;  %s1214_s20 = sphi %s1265_s20, %s1647_s20   ;;  %s1210_s19 = sphi %s1263_s19, %s1649_s19   ;;  %s1206_s18 = sphi %s1261_s18, %s1648_s18  }
   0xb   : > { %1623 = sst [smem:[#allocation16_spill]] %s1282_s22  ;;  %s53_s23 = sadd.s32 1, %s1214_s20 }
   0xc   : > { %s50_s24 = ssub.s32 %s1218_s21, %s1282_s22  ;;  %p1608_p0 = scmp.ne.s32.totalorder %s1214_s20, %s1210_s19 }
   0xd   : > { %p51_p1 = scmp.eq.s32.totalorder %s50_s24, 0  ;;  %p61_p2 = scmp.eq.s32.totalorder %s1218_s21, 0 }
   0xe   : > { %p976_p4 = scmp.lt.s32.totalorder %s1218_s21, 2  ;;  %s205_s26 = sand.u32 1, %s1218_s21  }
   0xf   : > { %s1293_s25 = scalar_select %p51_p1, %s1214_s20, %s53_s23  }
  0x10   : > { %p62_p5 = por %p61_p2, %p1608_p0  ;;  %s1300_s27 = sand.u32 1, %s1214_s20  }
  0x11   : > { %1624 = sst [smem:[#allocation17_spill]] %s1293_s25  ;;  %s910_s28 = sshll.u32 %s1300_s27, 6 }
  0x12   : > { %s933_s29 = sshll.u32 %s1218_s21, 9  ;;  %s1625_s1 = sld [smem:[#allocation18_spill]] }
  0x13   : > { %s209_s8 = scalar_lea.vmem [#allocation5], %s910_s28  ;;  %p1309_p6 = pnand %p976_p4, %p62_p5 }
  0x14   : > { %s216_s9 = sshll.u32 %s209_s8, 4  ;;  %s1315_s11 = scalar_lea.sflag [#allocation6], %s205_s26  ;;  %s1313_s9 = int_to_ptr.vmem [resolvable:$true] %s216_s9 }
  0x15   : > { %s1626_s10 = scalar_select %p1309_p6, 1, 0 }
  0x16   : > { %p1321_p8 = pneg %p1309_p6 }
  0x18   : > { %s1307_s7 = scalar_lea.hbm %s1625_s1, %s933_s29  ;;  %s1031_s16 = scalar_lea.hbm %s1625_s1, 2048 }
  0x19   : > { %s1026_s12 = scalar_lea.hbm %s1307_s7, 1024  ;;  %p1032_p11 = scmp.lt.u32.totalorder %s1307_s7, %s1625_s1 }
  0x1a   : > { %p1027_p7 = scmp.ne.s32.totalorder %s1307_s7, %s1026_s12  ;;  %p1033_p12 = scmp.lt.u32.totalorder %s1031_s16, %s1026_s12 }
  0x1b   : > { %s1627_s13 = scalar_select %p1321_p8, 1, 0 }
  0x1c   : > { %p1029_p9 = pnand %p1321_p8, %p1027_p7  ;;  %p1034_p13 = por %p1033_p12, %p1032_p11 }
  0x1d   : > { %p1035_p1 = scmp.lt.u32.totalorder %s1026_s12, %s1307_s7 }
  0x1e   : > { %p1030_p10 = pneg %p1029_p9 }
  0x1f   : > { %p1036_p2 = por %p1035_p1, %p1034_p13 }
  0x21   : > { %p1037_p4 = pnand %p1036_p2, %p1030_p10 }
  0x23   : > { %1040 = shalt.err (!%p1037_p4)
}
  0x24   : > { %s1041_s24 = scalar_lea.vmem %s1313_s9, 1024  ;;  %s1220_s26 = smov [#allocation5]  }
  0x25   : > { %p1042_p5 = scmp.ne.s32.totalorder %s1313_s9, %s1041_s24  ;;  %s1046_s28 = sshll.u32 %s1220_s26, 4  ;;  %s1047_s28 = int_to_ptr.vmem [resolvable:$false] %s1046_s28 }
  0x26   : > { %s1048_s29 = scalar_lea.vmem %s1047_s28, 2048  ;;  %p1049_p3 = scmp.lt.s32.totalorder %s1313_s9, %s1047_s28 }
  0x27   : > { %p1044_p7 = pnand %p1042_p5, %p1321_p8  ;;  %p1050_p0 = scmp.lt.s32.totalorder %s1048_s29, %s1041_s24 }
  0x29   : > { %p1045_p9 = pneg %p1044_p7  ;;  %p1051_p11 = por %p1050_p0, %p1049_p3 }
  0x2b   : > { %p1052_p12 = pnand %p1051_p11, %p1045_p9 }
  0x2d   : > { %1055 = shalt.err (!%p1052_p12)
}
  0x2e   : > { %s1221_s30 = smov 1024   ;;  %s1222_s6 = smov 512  }
  0x2f   : > { %s1223_s8 = smov 32   ;;  %s1346_s12 = sadd.s32 4294967295, %s1218_s21  }
  0x30   : > { %964 = dma.hbm_to_vmem [thread:$0]  (!%p1309_p6), %s1307_s7, 1024, %s1313_s9, %s1315_s11, %s1221_s30, %s1222_s6, %s1223_s8  }
  0x31   : > { %s906_s14 = sadd.s32 4294967294, %s1218_s21   ;;  %p66_p0 = scmp.ne.s32.totalorder %s1210_s19, %s1206_s18 }
  0x32   : > { %p1613_p3 = scmp.eq.s32.totalorder %s1346_s12, 0  ;;  %p168_p10 = scmp.eq.s32.totalorder %s1346_s12, 1 }
  0x33   : > { %p174_p13 = scmp.eq.s32.totalorder %s906_s14, 1  ;;  %p907_p1 = scmp.ge.s32.totalorder %s1218_s21, 1 }
  0x34   : > { %p1356_p2 = por %p1613_p3, %p66_p0  ;;  %p1629_p4 = scmp.ne.s32.totalorder %s1214_s20, %s1210_s19 }
  0x35   : > { %p1367_p7 = por %p174_p13, %p66_p0  ;;  %p181_p9 = scmp.lt.s32.totalorder %s1218_s21, 3 }
  0x36   : > { %s1628_s15 = scalar_select %p1356_p2, 1, 0 }
  0x37   : > { %p1363_p5 = por %p168_p10, %p1629_p4  ;;  %p1372_p11 = pnand %p907_p1, %p181_p9 }
  0x38   : > { %s1631_s9 = scalar_select %p1367_p7, 1, 0 }
  0x39   : > { %s1630_s7 = scalar_select %p1363_p5, 1, 0 }
  0x3a   : > { %s1632_s16 = scalar_select %p1372_p11, 1, 0 }
  0x3b   : > { %s1224_s17 = smov [#allocation2]   ;;  %s1609_s24 = sshll.u32 %s1300_s27, 2 }
  0x3c   : > { %s194_s23 = sshll.u32 %s1224_s17, 4  ;;  %p957_p12 = pneg %p1372_p11  ;;  %s195_s23 = int_to_ptr.vmem [resolvable:$true] %s194_s23 }
  0x3d   : > { %s934_s26 = sshll.u32 %s1218_s21, 6  ;;  %s230_s28 = scalar_lea.vmem [#allocation7], %s1609_s24 }
  0x3e   : > { %s238_s29 = sshll.u32 %s230_s28, 4  ;;  %p1384_p0 = pnand %p957_p12, %p1613_p3  ;;  %s1395_s29 = int_to_ptr.vmem [resolvable:$true] %s238_s29 }
  0x3f   : > { %s1393_s14 = scalar_lea.hbm %s1604_s2, %s934_s26  ;;  %s1056_s25 = scalar_lea.hbm %s1602_s0, 32 }
  0x40   : > { %p1057_p10 = scmp.ne.s32.totalorder %s1602_s0, %s1056_s25  ;;  %p1058_p13 = pneg %p1384_p0 }
  0x41   : > { %p1063_p9 = scmp.lt.u32.totalorder %s1056_s25, %s1602_s0 }
  0x42   : > { %p1059_p1 = pnand %p1058_p13, %p1057_p10 }
  0x44   : > { %p1060_p4 = pneg %p1059_p1 }
  0x46   : > { %p1065_p12 = pnand %p1063_p9, %p1060_p4 }
  0x48   : > { %1068 = shalt.err (!%p1065_p12)
}
  0x49   : > { %s1069_s6 = scalar_lea.vmem %s195_s23, 32  ;;  %p1077_p2 = scmp.lt.s32.totalorder %s195_s23, %s195_s23 }
  0x4a   : > { %p1070_p3 = scmp.ne.s32.totalorder %s195_s23, %s1069_s6  ;;  %p1078_p11 = scmp.lt.s32.totalorder %s1069_s6, %s1069_s6 }
  0x4c   : > { %p1072_p7 = pnand %p1070_p3, %p1058_p13  ;;  %p1079_p6 = por %p1078_p11, %p1077_p2 }
  0x4e   : > { %p1073_p5 = pneg %p1072_p7 }
  0x50   : > { %p1080_p8 = pnand %p1079_p6, %p1073_p5 }
  0x52   : > { %1083 = shalt.err (!%p1080_p8)
}
  0x53   : > { %960 = dma.hbm_to_vmem [thread:$0]  (!%p1384_p0), %s1602_s0, 32, %s195_s23, [#allocation3]  }
  0x54   : > { %s1084_s20 = scalar_lea.hbm %s1393_s14, 64  ;;  %p1634_p3 = scmp.ne.s32.totalorder %s1627_s13, 0 }
  0x55   : > { %p1085_p10 = scmp.ne.s32.totalorder %s1393_s14, %s1084_s20  ;;  %s1089_s8 = scalar_lea.hbm %s1604_s2, 128 }
  0x56   : > { %p1090_p6 = scmp.lt.u32.totalorder %s1393_s14, %s1604_s2  ;;  %p1091_p8 = scmp.lt.u32.totalorder %s1089_s8, %s1084_s20 }
  0x57   : > { %p1087_p7 = pnand %p1085_p10, %p1634_p3  ;;  %p1093_p5 = scmp.lt.u32.totalorder %s1084_s20, %s1393_s14 }
  0x58   : > { %p1092_p2 = por %p1091_p8, %p1090_p6 }
  0x59   : > { %p1088_p13 = pneg %p1087_p7 }
  0x5a   : > { %p1094_p11 = por %p1093_p5, %p1092_p2 }
  0x5c   : > { %p1095_p1 = pnand %p1094_p11, %p1088_p13 }
  0x5e   : > { %1098 = shalt.err (!%p1095_p1)
}
  0x5f   : > { %s1099_s23 = scalar_lea.vmem %s1395_s29, 64  ;;  %s1225_s28 = smov [#allocation7]  }
  0x60   : > { %p1100_p0 = scmp.ne.s32.totalorder %s1395_s29, %s1099_s23  ;;  %s1104_s6 = sshll.u32 %s1225_s28, 4  ;;  %s1105_s6 = int_to_ptr.vmem [resolvable:$false] %s1104_s6 }
  0x61   : > { %s1106_s1 = scalar_lea.vmem %s1105_s6, 128  ;;  %p1107_p12 = scmp.lt.s32.totalorder %s1395_s29, %s1105_s6 }
  0x62   : > { %p1102_p4 = pnand %p1100_p0, %p1634_p3  ;;  %p1108_p10 = scmp.lt.s32.totalorder %s1106_s1, %s1099_s23 }
  0x64   : > { %p1103_p9 = pneg %p1102_p4  ;;  %p1109_p7 = por %p1108_p10, %p1107_p12 }
  0x66   : > { %p1110_p6 = pnand %p1109_p7, %p1103_p9 }
  0x68   : > { %1113 = shalt.err (!%p1110_p6)
}
  0x69   : > { %p1635_p13 = scmp.ne.s32.totalorder %s1626_s10, 0  ;;  %s1440_s22 = scalar_lea.hbm %s1606_s4, %s934_s26 }
  0x6a   : > { %s1636_s25 = sshll.u32 %s1300_s27, 2  ;;  %s254_s30 = scalar_lea.sflag [#allocation9], %s1300_s27 }
  0x6b   : > { %967 = dma.hbm_to_vmem [thread:$0]  (!%p1635_p13), %s1393_s14, 64, %s1395_s29, %s1315_s11  }
  0x6c   : > { %s257_s8 = scalar_lea.vmem [#allocation8], %s1636_s25  ;;  %s1114_s23 = scalar_lea.hbm %s1440_s22, 64 }
  0x6d   : > { %s265_s17 = sshll.u32 %s257_s8, 4  ;;  %p1115_p8 = scmp.ne.s32.totalorder %s1440_s22, %s1114_s23  ;;  %s266_s17 = int_to_ptr.vmem [resolvable:$true] %s265_s17 }
  0x6e   : > { %s1119_s14 = scalar_lea.hbm %s1606_s4, 128  ;;  %p1120_p11 = scmp.lt.u32.totalorder %s1440_s22, %s1606_s4 }
  0x6f   : > { %p1117_p2 = pnand %p1115_p8, %p1634_p3  ;;  %p1121_p1 = scmp.lt.u32.totalorder %s1119_s14, %s1114_s23 }
  0x70   : > { %p1123_p4 = scmp.lt.u32.totalorder %s1114_s23, %s1440_s22 }
  0x71   : > { %p1118_p5 = pneg %p1117_p2  ;;  %p1122_p0 = por %p1121_p1, %p1120_p11 }
  0x73   : > { %p1124_p9 = por %p1123_p4, %p1122_p0 }
  0x75   : > { %p1125_p12 = pnand %p1124_p9, %p1118_p5 }
  0x77   : > { %1128 = shalt.err (!%p1125_p12)
}
  0x78   : > { %s1129_s27 = scalar_lea.vmem %s266_s17, 64  ;;  %s1226_s6 = smov [#allocation8]  }
  0x79   : > { %p1130_p10 = scmp.ne.s32.totalorder %s266_s17, %s1129_s27  ;;  %s1134_s1 = sshll.u32 %s1226_s6, 4  ;;  %s1135_s1 = int_to_ptr.vmem [resolvable:$false] %s1134_s1 }
  0x7a   : > { %s1136_s24 = scalar_lea.vmem %s1135_s1, 128  ;;  %p1137_p8 = scmp.lt.s32.totalorder %s266_s17, %s1135_s1 }
  0x7b   : > { %p1132_p7 = pnand %p1130_p10, %p1634_p3  ;;  %p1138_p2 = scmp.lt.s32.totalorder %s1136_s24, %s1129_s27 }
  0x7d   : > { %p1133_p6 = pneg %p1132_p7  ;;  %p1139_p13 = por %p1138_p2, %p1137_p8 }
  0x7f   : > { %p1140_p1 = pnand %p1139_p13, %p1133_p6 }
  0x81   : > { %1143 = shalt.err (!%p1140_p1)
}
  0x82   : > { %p1637_p11 = scmp.ne.s32.totalorder %s1626_s10, 0  ;;  %p1638_p5 = scmp.ne.s32.totalorder %s1632_s16, 0 }
  0x83   : > { %p1639_p0 = scmp.eq.s32.totalorder (!%p1638_p5), %s1346_s12, 0 }
  0x84   : > { %970 = dma.hbm_to_vmem [thread:$0]  (!%p1637_p11), %s1440_s22, 64, %s266_s17, %s254_s30  }
  0x85   : > { %274 = sbr.rel (%p1638_p5) target bundleno = 460 (0x1cc), region = 40 }
  0x8c   : > { %1189 = dma.done.wait (%p1639_p0), [#allocation3], 32   ;;  %p1640_p3 = pmov %p1639_p0 }
  0x8d   : > { %s280_s13 = sand.u32 1, %s1346_s12   ;;  %s1470_s20 = sand.u32 1, %s1210_s19  }
  0x8e   : > { %1191 = vsyncadd (%p1640_p3), [#allocation3], 4294967264  ;;  %s921_s25 = sshll.u32 %s1470_s20, 6  ;;  %s281_s10 = scalar_lea.sflag [#allocation6], %s280_s13 }
  0x8f   : > { %s284_s8 = scalar_lea.vmem [#allocation5], %s921_s25  ;;  %p1641_p13 = scmp.ne.s32.totalorder %s1628_s15, 0 }
  0x91   : > { %1193 = dma.done.wait (%p1641_p13), %s281_s10, 1088  }
  0x92   : > { %1195 = vsyncadd (%p1641_p13), %s281_s10, 4294966208  ;;  %s922_s16 = sshll.u32 %s1470_s20, 2  ;;  %s299_s17 = scalar_lea.sflag [#allocation9], %s1470_s20 }
  0x93   : > { %s1478_s22 = scalar_lea.vmem [#allocation7], %s922_s16  ;;  %s1481_s30 = scalar_lea.vmem [#allocation8], %s922_s16 }
  0x94   : > { %1197 = dma.done.wait (%p1641_p13), %s299_s17, 64  }
  0x95   : > { %1199 = vsyncadd (%p1641_p13), %s299_s17, 4294967232  ;;  %v1227_v0 = vmov 0.0   ;;  %v354_v1 = vld [vmem:[%s284_s8 + $0x8] sm:$0xff]  ;;  %v356_v3 = vld [vmem:[%s284_s8 + $0x18] sm:$0xff]  ;;  %vm383_vm0 = vcmask 130048   ;;  %v363_v14 = vlaneseq  ;;  %vm529_vm1 = vcmask 1041408  }
  0x96   : > { %451 = vmatprep.mubr.f32.mxu0 %v1227_v0  ;;  %522 = vmatprep.mubr.f32.mxu1 %v1227_v0  ;;  %v358_v2 = vld [vmem:[%s284_s8 + $0x28] sm:$0xff]  ;;  %v360_v5 = vld [vmem:[%s284_s8 + $0x38] sm:$0xff]  ;;  %v353_v6 = vld [vmem:[%s284_s8] sm:$0xff]  ;;  %s925_s15 = sshll.u32 %s1346_s12, 2  ;;  %s924_s14 = sshll.u32 %s1470_s20, 3 }
  0x97   : > { %v937_v4 = vpack.c.bf16 %v358_v2, %v354_v1  ;;  %v357_v7 = vld [vmem:[%s284_s8 + $0x20] sm:$0xff]  ;;  %v941_v8 = vpack.c.bf16 %v360_v5, %v356_v3  ;;  %v355_v10 = vld [vmem:[%s284_s8 + $0x10] sm:$0xff]  ;;  %v352_v13 = vld [vmem:[#allocation2] sm:$0x3]  ;;  %v1487_v15 = vshrl.u32 %v363_v14, 7  ;;  %p346_p4 = scmp.lt.s32.totalorder %s925_s15, 7 }
  0x98   : > { %v939_v9 = vpack.c.bf16 %v357_v7, %v353_v6  ;;  %v359_v11 = vld [vmem:[%s284_s8 + $0x30] sm:$0xff]  ;;  %v361_v17 = vld [vmem:[%s1478_s22] sm:$0xf]  ;;  %s936_s26 = sshll.u32 %s1346_s12, 7  ;;  %s342_s28 = scalar_lea.vmem [#allocation10], %s924_s14 }
  0x99   : > { %938 = vmatprep.subr.bf16.mxu0 %v937_v4  ;;  %v943_v12 = vpack.c.bf16 %v359_v11, %v355_v10  ;;  %942 = vmatprep.subr.bf16.mxu1 %v941_v8  ;;  %v1490_v16 = vsub.s32 0, %v1487_v15  ;;  %v1494_v18 = vsub.s32 2, %v1487_v15  ;;  %v1497_v19 = vsub.s32 1, %v1487_v15  ;;  %s1651_s15 = smov (!%p346_p4, %s925_s15), 7  ;;  %s772_s27 = sshll.u32 %s342_s28, 4  ;;  %s1560_s27 = int_to_ptr.vmem [resolvable:$true] %s772_s27 }
  0x9a   : > { %940 = vmatpush1.bf16.msra.mxu0 %v939_v9  ;;  %v1500_v20 = vsub.s32 3, %v1487_v15  ;;  %s348_s29 = scalar_lea.vmem %s1605_s3, %s1651_s15  ;;  %s1558_s24 = scalar_lea.hbm %s1607_s5, %s936_s26 }
  0x9b   : > { %944 = vmatpush1.bf16.msra.mxu1 %v943_v12  ;;  %v366_v21 = vrot.slane %v361_v17, %v1490_v16  ;;  %v374_v22 = vrot.slane %v361_v17, %v1494_v18  ;;  %v370_v23 = vrot.slane %v361_v17, %v1497_v19  ;;  %s758_s13 = scalar_lea.sflag [#allocation4], %s1470_s20  ;;  %s1144_s25 = scalar_lea.vmem %s1560_s27, 128 }
  0x9c   : > { %v378_v24 = vrot.slane %v361_v17, %v1500_v20  ;;  %p1145_p9 = scmp.ne.s32.totalorder %s1560_s27, %s1144_s25  ;;  %p1642_p12 = scmp.ne.s32.totalorder %s1630_s7, 0 }
  0x9d   : > { %926 = vmatmul.mubr.msk.f32.vlgmr.msra.gmra.mrb[0].mxu0 %vm383_vm0, %v352_v13  ;;  %s1230_s12 = smov [#allocation10]  }
  0x9e   : > { %927 = vmatmul.mubr.msk.f32.vlgmr.msra.gmra.mrb[0].mxu1 %vm383_vm0, %v352_v13  ;;  %p1146_p10 = pnand %p1145_p9, %p1642_p12  ;;  %s1148_s10 = sshll.u32 %s1230_s12, 4  ;;  %s1149_s10 = int_to_ptr.vmem [resolvable:$false] %s1148_s10 }
  0x9f   : > { %s1150_s8 = scalar_lea.vmem %s1149_s10, 256  ;;  %p1151_p6 = scmp.lt.s32.totalorder %s1560_s27, %s1149_s10 }
  0xa0   : > { %p1147_p7 = pneg %p1146_p10  ;;  %p1152_p8 = scmp.lt.s32.totalorder %s1150_s8, %s1144_s25 }
  0xa2   : > { %p1153_p2 = por %p1152_p8, %p1151_p6 }
  0xa4   : > { %p1154_p1 = pnand %p1153_p2, %p1147_p7 }
 0x170   : > { %v453_v25 = vpop.f32.mrb[0].mxu0 }
 0x171   : > { %v1506_v26 = vadd.f32 %v453_v25, %v366_v21  ;;  %v524_v27 = vpop.f32.mrb[0].mxu1  ;;  %v455_v28 = vpop.f32.mrb[1].mxu0 }
 0x172   : > { %v1508_v29 = vadd.f32 %v524_v27, %v374_v22  ;;  %v1510_v30 = vadd.f32 %v455_v28, %v370_v23  ;;  %v526_v31 = vpop.f32.mrb[1].mxu1 }
 0x173   : > { %v530_v32 = vsel %vm529_vm1, %v1506_v26, 0.0  ;;  %v558_v33 = vmul.f32 %v1506_v26, %v1506_v26  ;;  %v1516_v34 = vadd.f32 %v526_v31, %v378_v24 }
 0x174   : > { %v531_v35 = vrot.slane %v530_v32, 4  ;;  %v544_v36 = vsel %vm529_vm1, %v1508_v29, 0.0  ;;  %v560_v37 = vmul.f32 %v1508_v29, %v1508_v29  ;;  %v537_v38 = vsel %vm529_vm1, %v1510_v30, 0.0 }
 0x175   : > { %v562_v39 = vsel %vm529_vm1, %v558_v33, 0.0  ;;  %v545_v40 = vrot.slane %v544_v36, 4  ;;  %v538_v41 = vrot.slane %v537_v38, 4  ;;  %v559_v42 = vmul.f32 %v1510_v30, %v1510_v30 }
 0x176   : > { %v532_v43 = vadd.f32 %v531_v35, %v530_v32  ;;  %v563_v44 = vrot.slane %v562_v39, 4  ;;  %v576_v45 = vsel %vm529_vm1, %v560_v37, 0.0  ;;  %v551_v46 = vsel %vm529_vm1, %v1516_v34, 0.0 }
 0x177   : > { %v546_v47 = vadd.f32 %v545_v40, %v544_v36  ;;  %v577_v48 = vrot.slane %v576_v45, 4  ;;  %v539_v49 = vadd.f32 %v538_v41, %v537_v38  ;;  %v569_v50 = vsel %vm529_vm1, %v559_v42, 0.0 }
 0x178   : > { %v533_v51 = vrot.slane %v532_v43, 2  ;;  %v564_v52 = vadd.f32 %v563_v44, %v562_v39  ;;  %v570_v53 = vrot.slane %v569_v50, 4  ;;  %v552_v54 = vrot.slane %v551_v46, 4 }
 0x179   : > { %v547_v55 = vrot.slane %v546_v47, 2  ;;  %v578_v56 = vadd.f32 %v577_v48, %v576_v45  ;;  %v540_v57 = vrot.slane %v539_v49, 2  ;;  %v561_v58 = vmul.f32 %v1516_v34, %v1516_v34 }
 0x17a   : > { %v534_v59 = vadd.f32 %v533_v51, %v532_v43  ;;  %v565_v60 = vrot.slane %v564_v52, 2  ;;  %v571_v61 = vadd.f32 %v570_v53, %v569_v50  ;;  %v553_v62 = vadd.f32 %v552_v54, %v551_v46 }
 0x17b   : > { %v548_v63 = vadd.f32 %v547_v55, %v546_v47  ;;  %v579_v0 = vrot.slane %v578_v56, 2  ;;  %v541_v1 = vadd.f32 %v540_v57, %v539_v49  ;;  %v583_v2 = vsel %vm529_vm1, %v561_v58, 0.0 }
 0x17c   : > { %v535_v3 = vrot.slane %v534_v59, 1  ;;  %v566_v4 = vadd.f32 %v565_v60, %v564_v52  ;;  %v572_v5 = vrot.slane %v571_v61, 2  ;;  %v554_v6 = vrot.slane %v553_v62, 2 }
 0x17d   : > { %v549_v7 = vrot.slane %v548_v63, 1  ;;  %v580_v8 = vadd.f32 %v579_v0, %v578_v56  ;;  %v542_v9 = vrot.slane %v541_v1, 1  ;;  %v584_v10 = vrot.slane %v583_v2, 4 }
 0x17e   : > { %v536_v11 = vadd.f32 %v535_v3, %v534_v59  ;;  %v567_v12 = vrot.slane %v566_v4, 1  ;;  %v573_v13 = vadd.f32 %v572_v5, %v571_v61  ;;  %v555_v14 = vadd.f32 %v554_v6, %v553_v62 }
 0x17f   : > { %v550_v17 = vadd.f32 %v549_v7, %v548_v63  ;;  %v581_v21 = vrot.slane %v580_v8, 1  ;;  %v543_v22 = vadd.f32 %v542_v9, %v541_v1  ;;  %v585_v23 = vadd.f32 %v584_v10, %v583_v2  ;;  %v606_v7 = vld [vmem:[%s348_s29] sm:$0xf] }
 0x180   : > { %v568_v24 = vadd.f32 %v567_v12, %v566_v4  ;;  %v590_v25 = vmul.f32 0.5, %v536_v11  ;;  %v574_v27 = vrot.slane %v573_v13, 1  ;;  %v556_v28 = vrot.slane %v555_v14, 1 }
 0x181   : > { %v582_v31 = vadd.f32 %v581_v21, %v580_v8  ;;  %v592_v32 = vmul.f32 0.5, %v550_v17  ;;  %v591_v33 = vmul.f32 0.5, %v543_v22  ;;  %v586_v35 = vrot.slane %v585_v23, 2 }
 0x182   : > { %v594_v36 = vmul.f32 0.5, %v568_v24  ;;  %v598_v37 = vmul.f32 %v590_v25, %v590_v25  ;;  %v575_v38 = vadd.f32 %v574_v27, %v573_v13  ;;  %v557_v39 = vadd.f32 %v556_v28, %v555_v14 }
 0x183   : > { %v596_v40 = vmul.f32 0.5, %v582_v31  ;;  %v600_v41 = vmul.f32 %v592_v32, %v592_v32  ;;  %v599_v42 = vmul.f32 %v591_v33, %v591_v33  ;;  %v587_v43 = vadd.f32 %v586_v35, %v585_v23 }
 0x184   : > { %v602_v44 = vsub.f32 %v594_v36, %v598_v37  ;;  %v595_v45 = vmul.f32 0.5, %v575_v38  ;;  %v593_v46 = vmul.f32 0.5, %v557_v39  ;;  %v1228_v58 = vmov 1966171168   ;;  %v645_v39 = vld [vmem:[%s1481_s30] sm:$0xf] }
 0x185   : > { %v604_v47 = vsub.f32 %v596_v40, %v600_v41  ;;  %v588_v48 = vrot.slane %v587_v43, 1  ;;  %v622_v59 = vunpack.c.l.s4 %v1228_v58  ;;  %v1229_v40 = vmov 1983009808  }
 0x186   : > { %v607_v49 = vadd.f32 1e-05, %v602_v44  ;;  %v603_v50 = vsub.f32 %v595_v45, %v599_v42  ;;  %v601_v52 = vmul.f32 %v593_v46, %v593_v46 }
 0x187   : > { %v589_v51 = vadd.f32 %v588_v48, %v587_v43  ;;  %v609_v54 = vadd.f32 1e-05, %v604_v47  ;;  %v623_v61 = vunpack.c.0.s8 %v622_v59 }
 0x188   : > { %1018 = vrsqrt.f32 %v607_v49  ;;  %v608_v53 = vadd.f32 1e-05, %v603_v50 }
 0x189   : > { %v597_v55 = vmul.f32 0.5, %v589_v51  ;;  %v626_v0 = vsub.s32 %v623_v61, %v1487_v15 }
 0x18a   : > { %1020 = vrsqrt.f32 %v608_v53 }
 0x18b   : > { %v605_v56 = vsub.f32 %v597_v55, %v601_v52  ;;  %1022 = vrsqrt.f32 %v609_v54 }
 0x18d   : > { %v610_v57 = vadd.f32 1e-05, %v605_v56 }
 0x18f   : > { %1024 = vrsqrt.f32 %v610_v57 }
 0x192   : > { %v1019_v60 = vpop.eup %1018 }
 0x194   : > { %v1021_v62 = vpop.eup %1020 }
 0x195   : > { %v619_v63 = vcombine.low %v1019_v60, %v1021_v62  ;;  %v1023_v1 = vpop.eup %1022 }
 0x197   : > { %v627_v4 = vrot.slane %v619_v63, %v626_v0 }
 0x199   : > { %v1025_v2 = vpop.eup %1024 }
 0x19a   : > { %v620_v3 = vcombine.low %v1023_v1, %v1025_v2 }
 0x19c   : > { %v634_v5 = vrot.slane %v620_v3, %v626_v0 }
 0x19e   : > { %v635_v6 = vcombine.low %v627_v4, %v634_v5 }
 0x1a0   : > { %v642_v8 = vrot.slane %v635_v6, %v626_v0 }
 0x1a2   : > { %v644_v9 = vmul.f32 %v642_v8, %v606_v7 }
 0x1a4   : > { %v650_v10 = vrot.slane %v644_v9, %v1490_v16  ;;  %v654_v11 = vrot.slane %v644_v9, %v1497_v19  ;;  %v658_v12 = vrot.slane %v644_v9, %v1494_v18  ;;  %v662_v13 = vrot.slane %v644_v9, %v1500_v20 }
 0x1a6   : > { %v667_v14 = vmul.f32 %v650_v10, %v590_v25  ;;  %v668_v17 = vmul.f32 %v654_v11, %v591_v33  ;;  %v669_v21 = vmul.f32 %v658_v12, %v592_v32  ;;  %v670_v22 = vmul.f32 %v662_v13, %v593_v46 }
 0x1a7   : > { %v703_v23 = vmul.f32 %v658_v12, %v1508_v29  ;;  %v704_v24 = vmul.f32 %v662_v13, %v1516_v34  ;;  %v701_v27 = vmul.f32 %v650_v10, %v1506_v26  ;;  %v702_v28 = vmul.f32 %v654_v11, %v1510_v30 }
 0x1a8   : > { %v675_v31 = vcombine.low %v667_v14, %v668_v17  ;;  %v676_v35 = vcombine.low %v669_v21, %v670_v22  ;;  %v741_v25 = vunpack.c.l.s4 %v1229_v40 }
 0x1aa   : > { %v683_v36 = vrot.slane %v675_v31, %v626_v0  ;;  %v690_v37 = vrot.slane %v676_v35, %v626_v0  ;;  %v742_v41 = vunpack.c.0.s8 %v741_v25 }
 0x1ac   : > { %v691_v38 = vcombine.low %v683_v36, %v690_v37  ;;  %v745_v46 = vsub.s32 %v742_v41, %v1487_v15 }
 0x1ae   : > { %v698_v33 = vrot.slane %v691_v38, %v626_v0 }
 0x1b0   : > { %v700_v32 = vsub.f32 %v645_v39, %v698_v33 }
 0x1b2   : > { %v717_v29 = vrot.slane %v700_v32, %v1494_v18  ;;  %v721_v34 = vrot.slane %v700_v32, %v1500_v20  ;;  %v709_v26 = vrot.slane %v700_v32, %v1490_v16  ;;  %v713_v30 = vrot.slane %v700_v32, %v1497_v19 }
 0x1b4   : > { %v728_v42 = vadd.f32 %v717_v29, %v703_v23  ;;  %v729_v43 = vadd.f32 %v721_v34, %v704_v24  ;;  %v726_v44 = vadd.f32 %v709_v26, %v701_v27  ;;  %v727_v45 = vadd.f32 %v713_v30, %v702_v28 }
 0x1b6   : > { %v732_v47 = vmax.f32 %v728_v42, 0.0  ;;  %v733_v48 = vmax.f32 %v729_v43, 0.0  ;;  %v730_v49 = vmax.f32 %v726_v44, 0.0  ;;  %v731_v18 = vmax.f32 %v727_v45, 0.0 }
 0x1b8   : > { %v739_v50 = vcombine.low %v732_v47, %v733_v48  ;;  %v738_v51 = vcombine.low %v730_v49, %v731_v18 }
 0x1ba   : > { %v753_v16 = vrot.slane %v739_v50, %v745_v46  ;;  %v746_v19 = vrot.slane %v738_v51, %v745_v46 }
 0x1bc   : > { %v754_v20 = vcombine.low %v746_v19, %v753_v16 }
 0x1be   : > { %756 = vst [vmem:[%s342_s28] sm:$0xff] %v754_v20 }
 0x1bf   : > { %1157 = shalt.err (!%p1154_p1)
}
 0x1c0   : > { %s1158_s20 = scalar_lea.hbm %s1558_s24, 128  ;;  %s1162_s17 = scalar_lea.hbm %s1607_s5, 256 }
 0x1c1   : > { %p1159_p11 = scmp.ne.s32.totalorder %s1558_s24, %s1158_s20  ;;  %p1163_p3 = scmp.lt.u32.totalorder %s1558_s24, %s1607_s5 }
 0x1c2   : > { %p1164_p13 = scmp.lt.u32.totalorder %s1162_s17, %s1158_s20  ;;  %p1166_p9 = scmp.lt.u32.totalorder %s1158_s20, %s1558_s24 }
 0x1c3   : > { %p1160_p5 = pnand %p1159_p11, %p1642_p12 }
 0x1c4   : > { %p1165_p4 = por %p1164_p13, %p1163_p3 }
 0x1c5   : > { %p1161_p0 = pneg %p1160_p5 }
 0x1c6   : > { %p1167_p10 = por %p1166_p9, %p1165_p4 }
 0x1c8   : > { %p1168_p7 = pnand %p1167_p10, %p1161_p0 }
 0x1ca   : > { %1171 = shalt.err (!%p1168_p7)
}
 0x1cb   : > { %955 = dma.vmem_to_hbm [thread:$0]  (%p1642_p12), %s1560_s27, 128, %s1558_s24, %s758_s13  }
 0x1cc PF: > { %s784_s23 = sand.u32 1, %s1206_s18   ;;  %p1643_p6 = scmp.ne.s32.totalorder %s1631_s9, 0 }
 0x1cd   : > { %p1644_p8 = scmp.ge.s32.totalorder %s1218_s21, 2  ;;  %s785_s11 = scalar_lea.sflag [#allocation4], %s784_s23 }
 0x1cf   : > { %p972_p2 = pnand %p1644_p8, %p1643_p6 }
 0x1d1   : > { %1201 = dma.done.wait (!%p972_p2), %s785_s11, 128  }
 0x1d2   : > { %1203 = vsyncadd (!%p972_p2), %s785_s11, 4294967168  ;;  %s1645_s21 = sld [smem:[#allocation16_spill]]  ;;  %s1646_s29 = sld [smem:[#allocation15_spill]] }
 0x1d3   : > { %s1647_s20 = sld [smem:[#allocation17_spill]]  ;;  %s1648_s18 = smov %s1210_s19 }
 0x1d8   : > { %p22_p1 = scmp.ge.s32.totalorder %s1645_s21, 4   ;;  %s1649_s19 = smov %s1646_s29 }
 0x1da   :  { %24 = sbr.rel (!%p22_p1) target bundleno = 10 (0xa), region = 117 }
 0x1e1   :  { %790 = vsyncpa [#allocation3], 1 }
 0x1e2   :  { %792 = vsyncpa [#allocation3 + $0x1], 1 }
 0x1e3   :  { %793 = vsyncpa [#allocation6], 1 }
 0x1e4   :  { %795 = vsyncpa [#allocation6 + $0x1], 1 }
 0x1e5   :  { %796 = vsyncpa [#allocation9], 1 }
 0x1e6   :  { %798 = vsyncpa [#allocation9 + $0x1], 1 }
 0x1e7   :  { %799 = vsyncpa [#allocation4], 1 }
 0x1e8   :  { %801 = vsyncpa [#allocation4 + $0x1], 1 }

</bundles_post_ra>
